<compile_context>
chip_gen: v5e
topology: v5e:2x2
jax: 0.10.0
libtpu: 0.0.40
codegen_flags: <defaults>
</compile_context>

<pallas_src>
import jax
import jax.numpy as jnp
from jax.experimental import pallas as pl
from jax.experimental.pallas import tpu as pltpu

N_STATES = 16                       # one-hot width used for `state`
N_ACTIONS = 5                       # one-hot width used for `action`
N_FEATURES = N_STATES + N_ACTIONS   # 21
N_PAIRS = N_STATES * N_ACTIONS      # 80 distinct (state, action) pairs
TABLE_W = 128                       # Q-table padded to a full lane width


def _round_up(x, m):
    return ((x + m - 1) // m) * m


# ---------------------------------------------------------------------------
# Stage 1: build the Q-table  table[k] = relu(W1 @ x_k) @ W2^T  for every
# pair k = state * 5 + action (columns k >= 80 are exactly zero).
# One merged L1 matmul over all 80 pairs; lane-dense (8, 128) output.
# ---------------------------------------------------------------------------
def _qtable_kernel(w1_ref, sel_ref, w2_ref, table_ref):
    # w1_ref   : (H, 21)   f32  L1 weight (PyTorch layout)
    # sel_ref  : (21, 128) f32  column k = concatenated one-hot of pair k
    # w2_ref   : (8, H)    f32  L2 weight row replicated over 8 sublanes
    # table_ref: (8, 128)  f32  all rows identical; row 0 is the Q-table
    h = jnp.dot(w1_ref[...], sel_ref[...],
                preferred_element_type=jnp.float32)               # (H, 128)
    h = jnp.maximum(h, 0.0)                                       # ReLU
    table_ref[...] = jnp.dot(w2_ref[...], h,
                             preferred_element_type=jnp.float32)  # (8, 128)


# ---------------------------------------------------------------------------
# Stage 2: per-batch lookup, batch in the lane dimension.
# ---------------------------------------------------------------------------
def _lookup_kernel(s_ref, a_ref, table_ref, out_ref):
    # s_ref, a_ref: (1, TB) int32 ; table_ref: (8, 128) f32 ; out_ref: (1, TB) f32
    tb = s_ref.shape[1]
    s = s_ref[...]
    a = a_ref[...]
    valid = (s >= 0) & (s < N_STATES) & (a >= 0) & (a < N_ACTIONS)
    idx = jnp.where(valid, s * N_ACTIONS + a, TABLE_W - 1)        # (1, TB)
    k = jax.lax.broadcasted_iota(jnp.int32, (TABLE_W, tb), 0)
    oh = (k == idx).astype(jnp.float32)                           # (128, TB)
    q = jnp.dot(table_ref[...], oh,
                preferred_element_type=jnp.float32)               # (8, TB)
    out_ref[...] = q[0:1, :]                                      # lane-dense store


def _pair_selector():
    """(21, 128) f32 constant: column k < 80 is the concatenated one-hot
    feature vector of (state=k//5, action=k%5); columns 80..127 are zero."""
    k = jnp.arange(TABLE_W)
    s_k = k // N_ACTIONS
    a_k = k % N_ACTIONS
    valid = k < N_PAIRS
    feat = jnp.arange(N_FEATURES)[:, None]                        # (21, 1)
    sel = (feat == s_k[None, :]) | (feat == N_STATES + a_k[None, :])
    sel = sel & valid[None, :]
    return sel.astype(jnp.float32)


def criticq_forward(state, action, w1, w2, *, batch_tile=2048):
    """state, action: int arrays of shape (B,) or scalars ().
    w1: (hidden, 21) float32 (PyTorch Linear weight layout),
    w2: (1, hidden)  float32.
    Returns (B, 1) float32 Q-values."""
    state = jnp.asarray(state)
    action = jnp.asarray(action)
    if state.ndim == 0:                      # scalar case in the PyTorch forward
        state = state.reshape(1)
        action = action.reshape(1)
    B = state.shape[0]

    w1 = jnp.asarray(w1, jnp.float32)
    w2 = jnp.asarray(w2, jnp.float32)
    H = w1.shape[0]
    w2_rows = jnp.broadcast_to(w2.reshape(1, H), (8, H))
    sel = _pair_selector()

    # ---- Stage 1: Q-table (cost independent of B) -------------------------
    table = pl.pallas_call(
        _qtable_kernel,
        out_shape=jax.ShapeDtypeStruct((8, TABLE_W), jnp.float32),
        in_specs=[pl.BlockSpec(memory_space=pltpu.MemorySpace.VMEM)] * 3,
        out_specs=pl.BlockSpec(memory_space=pltpu.MemorySpace.VMEM),
    )(w1, sel, w2_rows)

    # ---- Stage 2: tiled, lane-dense batch lookup ---------------------------
    tb = min(batch_tile, _round_up(B, 128))          # lanes per grid step
    b_pad = _round_up(B, tb)
    s_lane = jnp.pad(state.astype(jnp.int32), (0, b_pad - B)).reshape(1, b_pad)
    a_lane = jnp.pad(action.astype(jnp.int32), (0, b_pad - B)).reshape(1, b_pad)

    out = pl.pallas_call(
        _lookup_kernel,
        out_shape=jax.ShapeDtypeStruct((1, b_pad), jnp.float32),
        grid=(b_pad // tb,),
        in_specs=[
            pl.BlockSpec((1, tb), lambda i: (0, i)),
            pl.BlockSpec((1, tb), lambda i: (0, i)),
            pl.BlockSpec((8, TABLE_W), lambda i: (0, 0)),
        ],
        out_specs=pl.BlockSpec((1, tb), lambda i: (0, i)),
        compiler_params=pltpu.CompilerParams(
            dimension_semantics=("parallel",)),
    )(s_lane, a_lane, table)

    return out[0, :B].reshape(B, 1)


def _reference_forward(state, action, w1, w2):
    """Pure-JAX reference mirroring the PyTorch module."""
    state = jnp.asarray(state).reshape(-1)
    action = jnp.asarray(action).reshape(-1)
    oh_s = jax.nn.one_hot(state, N_STATES, dtype=jnp.float32)
    oh_a = jax.nn.one_hot(action, N_ACTIONS, dtype=jnp.float32)
    x = jnp.concatenate([oh_s, oh_a], axis=1)            # (B, 21)
    x1 = jax.nn.relu(x @ w1.T)
    return x1 @ w2.T


if __name__ == "__main__":
    key = jax.random.PRNGKey(0)
    k_s, k_a, k_w1, k_w2 = jax.random.split(key, 4)

    B = 8
    hidden_size = 32

    # PyTorch Linear default init: U(-1/sqrt(in_features), 1/sqrt(in_features)).
    bound1 = 1.0 / jnp.sqrt(jnp.float32(N_FEATURES))
    bound2 = 1.0 / jnp.sqrt(jnp.float32(hidden_size))
    w1 = jax.random.uniform(k_w1, (hidden_size, N_FEATURES),
                            jnp.float32, -bound1, bound1)
    w2 = jax.random.uniform(k_w2, (1, hidden_size),
                            jnp.float32, -bound2, bound2)

    # Integer state / action indices, as the PyTorch forward expects.
    state = jax.random.randint(k_s, (B,), 0, N_STATES, dtype=jnp.int32)
    action = jax.random.randint(k_a, (B,), 0, N_ACTIONS, dtype=jnp.int32)

    out = jax.block_until_ready(criticq_forward(state, action, w1, w2))
    ref = _reference_forward(state, action, w1, w2)
    assert out.shape == (B, 1)
    assert jnp.allclose(out, ref, atol=1e-5, rtol=1e-5), (out, ref)

    # Scalar (single env-step) path, as in the PyTorch forward.
    out_s = jax.block_until_ready(criticq_forward(state[0], action[0], w1, w2))
    assert out_s.shape == (1, 1)
    assert jnp.allclose(out_s, ref[0:1], atol=1e-5, rtol=1e-5), (out_s, ref[0:1])

    print("KERNEL_OK")
</pallas_src>

<mosaic_0001>
module attributes {stable_mosaic.version = 11 : i64} {
  func.func @_qtable_kernel(%arg0: memref<32x21xf32, #tpu.memory_space<vmem>>, %arg1: memref<21x128xf32, #tpu.memory_space<vmem>>, %arg2: memref<8x32xf32, #tpu.memory_space<vmem>>, %arg3: memref<8x128xf32, #tpu.memory_space<vmem>>) attributes {dimension_semantics = [], scalar_prefetch = 0 : i64, scratch_operands = 0 : i64, tpu.core_type = #tpu.core_type<tc>} {
    %c0 = arith.constant 0 : index
    %c0_0 = arith.constant 0 : index
    %0 = vector.load %arg0[%c0, %c0_0] : memref<32x21xf32, #tpu.memory_space<vmem>>, vector<32x21xf32>
    %c0_1 = arith.constant 0 : index
    %c0_2 = arith.constant 0 : index
    %1 = vector.load %arg1[%c0_1, %c0_2] : memref<21x128xf32, #tpu.memory_space<vmem>>, vector<21x128xf32>
    %cst = arith.constant dense<0.000000e+00> : vector<32x128xf32>
    %2 = tpu.matmul %0, %1, %cst {dimension_numbers = #tpu.dot_dimension_numbers<[1], [0], [0], [1], [0, 0, 1, 1], [], []>} : vector<32x21xf32>, vector<21x128xf32>, vector<32x128xf32> -> vector<32x128xf32>
    %cst_3 = arith.constant 0.000000e+00 : f32
    %3 = vector.broadcast %cst_3 : f32 to vector<32x128xf32>
    %4 = arith.maximumf %2, %3 : vector<32x128xf32>
    %c0_4 = arith.constant 0 : index
    %c0_5 = arith.constant 0 : index
    %5 = vector.load %arg2[%c0_4, %c0_5] : memref<8x32xf32, #tpu.memory_space<vmem>>, vector<8x32xf32>
    %cst_6 = arith.constant dense<0.000000e+00> : vector<8x128xf32>
    %6 = tpu.matmul %5, %4, %cst_6 {dimension_numbers = #tpu.dot_dimension_numbers<[1], [0], [0], [1], [0, 0, 1, 1], [], []>} : vector<8x32xf32>, vector<32x128xf32>, vector<8x128xf32> -> vector<8x128xf32>
    %c0_7 = arith.constant 0 : index
    %c0_8 = arith.constant 0 : index
    %7 = vector.load %arg3[%c0_7, %c0_8] : memref<8x128xf32, #tpu.memory_space<vmem>>, vector<8x128xf32>
    tpu.vector_store %arg3[%c0_7, %c0_8], %6 {strides = array<i32>} : memref<8x128xf32, #tpu.memory_space<vmem>>, vector<8x128xf32>,
    return
  }
}

</mosaic_0001>

<bundles_post_ra>
// kernel: tpu_custom_call.1
= control target key start
LH: loop header
LB: loop body
LE: loop exit
PB: predicated region body
PF: predicated region fallthrough
CT: control target
= control target key end

     0   :  { %vm35_vm0 = vcmask 1044480   ;;  %s201_s0 = inlined_call_operand.vmem [shape: f32[32,21], index: 0, kind: input, shape index: {}]   ;;  %s202_s1 = inlined_call_operand.vmem [shape: f32[21,128], index: 1, kind: input, shape index: {}]   ;;  %s203_s2 = inlined_call_operand.vmem [shape: f32[8,32], index: 2, kind: input, shape index: {}]   ;;  %s204_s3 = inlined_call_operand.hbm [shape: f32[8,128], index: 3, kind: output, shape index: {}]  }
   0x1   :  { %v21_v0 = vld [vmem:[%s202_s1 + $0x10] sm:$0x1f]  ;;  %v20_v1 = vld [vmem:[%s202_s1 + $0x8] sm:$0xff]  ;;  %v19_v2 = vld [vmem:[%s202_s1] sm:$0xff] }
   0x2   :  { %120 = vmatpush.msk.msra.mxu2 %vm35_vm0, %v21_v0  ;;  %121 = vmatpush.msk.msra.mxu3 %vm35_vm0, %v21_v0 }
   0x3   :  { %114 = vmatpush.msk.msra.mxu0 %vm35_vm0, %v21_v0 }
   0x4   :  { %8 = vsyncpa [#allocation3], 0  ;;  %122 = vmatpush.msra.mxu2 %v20_v1  ;;  %v16_v3 = vld [vmem:[%s201_s0 + $0x8] sm:$0xff]  ;;  %vm22_vm1 = vcmask 171008   ;;  %123 = vmatpush.msra.mxu3 %v20_v1  ;;  %v18_v4 = vld [vmem:[%s201_s0 + $0x18] sm:$0xff]  ;;  %vm73_vm2 = vcmask 261120  }
   0x5   :  { %53 = vmatpush.msra.mxu0 %v20_v1  ;;  %v15_v5 = vld [vmem:[%s201_s0] sm:$0xff]  ;;  %v17_v6 = vld [vmem:[%s201_s0 + $0x10] sm:$0xff]  ;;  %s153_s0 = smov [#allocation2]   ;;  %s105_s30 = sshll.u32 %s204_s3, 4  ;;  %s106_s30 = int_to_ptr.hbm [resolvable:$true] %s105_s30 }
   0x6   :  { %124 = vmatpush.msra.mxu2 %v19_v2  ;;  %125 = vmatpush.msra.mxu3 %v19_v2  ;;  %v72_v15 = vld [vmem:[%s203_s2] sm:$0xff]  ;;  %s103_s27 = sshll.u32 %s153_s0, 4  ;;  %s104_s27 = int_to_ptr.vmem [resolvable:$true] %s103_s27 }
   0x7   :  { %116 = vmatmul.msk.f32.vlgmr.msra.gmra.mxu2 %vm22_vm1, %v16_v3  ;;  %118 = vmatmul.msk.f32.vlgmr.msra.gmra.mxu3 %vm22_vm1, %v18_v4 }
   0x8   :  { %54 = vmatpush.msra.mxu0 %v19_v2 }
   0x9   :  { %115 = vmatmul.msk.f32.vlgmr.msra.gmra.mxu0 %vm22_vm1, %v15_v5 }
   0xf   :  { %117 = vmatmul.msk.f32.gmra.mxu2 %vm22_vm1, %v17_v6 }
  0x86   :  { %v56_v11 = vpop.f32.mrf.mxu0 }
  0x87   :  { %v68_v14 = vmax.f32 %v56_v11, 0.0 }
  0x8a   :  { %v59_v7 = vpop.f32.mrf.mxu2  ;;  %v65_v8 = vpop.f32.mrf.mxu3 }
  0x8b   :  { %v71_v9 = vmax.f32 %v65_v8, 0.0  ;;  %v69_v13 = vmax.f32 %v59_v7, 0.0 }
  0x8d   :  { %89 = vmatpush.msra.mxu1 %v71_v9 }
  0x92   :  { %v62_v10 = vpop.f32.mrf.mxu2 }
  0x93   :  { %v70_v12 = vmax.f32 %v62_v10, 0.0 }
  0x95   :  { %90 = vmatpush.msra.mxu1 %v70_v12 }
  0x97   :  { %91 = vmatpush.msra.mxu1 %v69_v13 }
  0x99   :  { %92 = vmatpush.msra.mxu1 %v68_v14 }
  0x9a   :  { %119 = vmatmul.msk.f32.vlgmr.msra.gmra.mxu1 %vm73_vm2, %v72_v15 }
 0x117   :  { %v94_v16 = vpop.f32.mrf.mxu1 }
 0x118   :  { %97 = vst [vmem:[#allocation2] sm:$0xff] %v94_v16 }
 0x119   :  { %108 = dma.vmem_to_hbm [thread:$0]  %s104_s27, 128, %s106_s30, [#allocation3]  }
 0x11a   :  { %151 = dma.done.wait [#allocation3], 128  }
 0x11b   :  { %152 = vsyncadd [#allocation3], 4294967168 }
 0x11c   :  { %113 = vsyncpa [#allocation3], 1 }

</bundles_post_ra>
